<compile_context>
chip_gen: v7x
topology: tpu7x:2x2x1
jax: 0.10.0
libtpu: 0.0.40
codegen_flags: <defaults>
</compile_context>

<pallas_src>
import functools

import jax
import jax.numpy as jnp
from jax.experimental import pallas as pl
from jax.experimental.pallas import tpu as pltpu

LANE = 128
HIDDEN = 256


def _round_up(n, m):
    return ((n + m - 1) // m) * m


def net_kernel(x_ref,
               w1_ref, b1_ref,
               w2_ref, b2_ref,
               w3_ref, b3_ref,
               wh_ref, bh_ref,
               out_ref, *, output_dim):
    # Trunk: bf16 operands on the MXU, f32 accumulation, f32 bias/ReLU on the
    # VPU (portable across v5e/v6e/v7x).
    h = jnp.dot(x_ref[...].astype(jnp.bfloat16), w1_ref[...],
                preferred_element_type=jnp.float32) + b1_ref[...]
    h = jnp.maximum(h, 0.0)
    h = jnp.dot(h.astype(jnp.bfloat16), w2_ref[...],
                preferred_element_type=jnp.float32) + b2_ref[...]
    h = jnp.maximum(h, 0.0)
    h = jnp.dot(h.astype(jnp.bfloat16), w3_ref[...],
                preferred_element_type=jnp.float32) + b3_ref[...]
    h = jnp.maximum(h, 0.0)

    # Fused policy+value head: single lane-dense (tb, 128) result block.
    # Lanes [0, output_dim) = policy logits, lane output_dim = value logit,
    # remaining lanes = exactly 0 (zero-padded weights/bias).
    head = jnp.dot(h.astype(jnp.bfloat16), wh_ref[...],
                   preferred_element_type=jnp.float32) + bh_ref[...]

    lane = jax.lax.broadcasted_iota(jnp.int32, head.shape, dimension=1)
    is_policy = lane < output_dim
    is_value = lane == output_dim

    # Stable softmax over the real policy lanes only.  The max is taken over a
    # static sub-lane slice of the policy lanes (exact stabilizer, no -inf
    # arithmetic); non-policy lanes are zeroed out of numerator and denominator.
    m = jnp.max(head[:, :output_dim], axis=-1, keepdims=True)
    e = jnp.where(is_policy, jnp.exp(head - m), 0.0)
    denom = jnp.sum(e, axis=-1, keepdims=True)
    probs = e * pl.reciprocal(denom, approx=True)

    # tanh only on the value lane (static slice), broadcast into the select.
    v = jnp.tanh(head[:, output_dim:output_dim + 1])

    # policy in lanes [0, output_dim), tanh(value) in lane output_dim,
    # zeros elsewhere (probs is already 0 on padded lanes).
    out_ref[...] = jnp.where(is_value, v, probs).astype(out_ref.dtype)


def pack_params(params):
    """Fuse / pad / cast the raw f32 params once (keep the result resident)."""
    input_dim = params["w1"].shape[0]
    output_dim = params["wp"].shape[1]
    assert output_dim >= 1, "softmax head needs at least one policy lane"
    n_pad = _round_up(output_dim + 1, LANE)

    wh = jnp.concatenate([params["wp"], params["wv"]], axis=1)          # (256, OUT+1)
    wh = jnp.zeros((HIDDEN, n_pad), jnp.float32).at[:, :output_dim + 1].set(wh)
    bh = jnp.concatenate([params["bp"], params["bv"]], axis=1)          # (1, OUT+1)
    bh = jnp.zeros((1, n_pad), jnp.float32).at[:, :output_dim + 1].set(bh)

    return {
        "w1": params["w1"].astype(jnp.bfloat16), "b1": params["b1"].astype(jnp.float32),
        "w2": params["w2"].astype(jnp.bfloat16), "b2": params["b2"].astype(jnp.float32),
        "w3": params["w3"].astype(jnp.bfloat16), "b3": params["b3"].astype(jnp.float32),
        "wh": wh.astype(jnp.bfloat16), "bh": bh,
        "input_dim": input_dim, "output_dim": output_dim, "n_pad": n_pad,
    }


def net_forward(x, packed, *, block_b=512):
    B = x.shape[0]
    input_dim = packed["input_dim"]
    output_dim = packed["output_dim"]
    n_pad = packed["n_pad"]

    # Batch tiling: whole batch in one step when it fits a block; otherwise
    # pick a tile that guarantees >=2 grid steps so the "parallel" batch axis
    # shards across both v7x TensorCores (no-op on v5e/v6e).
    if B <= block_b:
        tb = _round_up(B, 8)
    else:
        tb = min(block_b, _round_up(pl.cdiv(B, 2), 8))
    b_pad = _round_up(B, tb)

    # Only the batch dim is padded (cheap); feature dim stays at input_dim.
    xp = x if b_pad == B else (
        jnp.zeros((b_pad, input_dim), x.dtype).at[:B, :].set(x))

    grid = (b_pad // tb,)

    flops = 2 * b_pad * (input_dim * HIDDEN + 2 * HIDDEN * HIDDEN + HIDDEN * n_pad)
    transcendentals = b_pad * (n_pad + 2)                     # exp + tanh + rcp
    bytes_accessed = (
        b_pad * input_dim * 4                                 # x (f32)
        + (packed["w1"].size + packed["w2"].size
           + packed["w3"].size + packed["wh"].size) * 2       # bf16 weights
        + (packed["b1"].size + packed["b2"].size
           + packed["b3"].size + packed["bh"].size) * 4       # f32 biases
        + b_pad * n_pad * 2)                                  # bf16 output

    out = pl.pallas_call(
        functools.partial(net_kernel, output_dim=output_dim),
        out_shape=jax.ShapeDtypeStruct((b_pad, n_pad), jnp.bfloat16),
        grid=grid,
        in_specs=[
            pl.BlockSpec((tb, input_dim), lambda i: (i, 0)),       # x (raw f32)
            pl.BlockSpec((input_dim, HIDDEN), lambda i: (0, 0)),   # w1
            pl.BlockSpec((1, HIDDEN), lambda i: (0, 0)),           # b1
            pl.BlockSpec((HIDDEN, HIDDEN), lambda i: (0, 0)),      # w2
            pl.BlockSpec((1, HIDDEN), lambda i: (0, 0)),           # b2
            pl.BlockSpec((HIDDEN, HIDDEN), lambda i: (0, 0)),      # w3
            pl.BlockSpec((1, HIDDEN), lambda i: (0, 0)),           # b3
            pl.BlockSpec((HIDDEN, n_pad), lambda i: (0, 0)),       # fused head W
            pl.BlockSpec((1, n_pad), lambda i: (0, 0)),            # fused head b
        ],
        out_specs=pl.BlockSpec((tb, n_pad), lambda i: (i, 0)),
        compiler_params=pltpu.CompilerParams(
            dimension_semantics=("parallel",)),
        cost_estimate=pl.CostEstimate(flops=flops,
                                      transcendentals=transcendentals,
                                      bytes_accessed=bytes_accessed),
    )(xp,
      packed["w1"], packed["b1"],
      packed["w2"], packed["b2"],
      packed["w3"], packed["b3"],
      packed["wh"], packed["bh"])

    # NOTE: bf16 output + approx reciprocal -> policy rows sum to 1 only to
    # ~1e-2; renormalize here if an exact simplex is required downstream.
    policy = out[:B, :output_dim].astype(jnp.float32)
    value = out[:B, output_dim:output_dim + 1].astype(jnp.float32)
    return policy, value


def init_params(key, input_dim, output_dim, hidden=HIDDEN):
    """Deterministic synthetic init (PyTorch-like uniform fan-in scaling)."""
    keys = jax.random.split(key, 10)

    def linear(kw, kb, fan_in, fan_out):
        bound = 1.0 / jnp.sqrt(fan_in)
        w = jax.random.uniform(kw, (fan_in, fan_out), jnp.float32, -bound, bound)
        b = jax.random.uniform(kb, (1, fan_out), jnp.float32, -bound, bound)
        return w, b

    w1, b1 = linear(keys[0], keys[1], input_dim, hidden)
    w2, b2 = linear(keys[2], keys[3], hidden, hidden)
    w3, b3 = linear(keys[4], keys[5], hidden, hidden)
    wp, bp = linear(keys[6], keys[7], hidden, output_dim)
    wv, bv = linear(keys[8], keys[9], hidden, 1)
    return {"w1": w1, "b1": b1, "w2": w2, "b2": b2, "w3": w3, "b3": b3,
            "wp": wp, "bp": bp, "wv": wv, "bv": bv}


def net_reference(x, params):
    """Pure-JAX f32 reference for correctness checking."""
    h = jnp.maximum(x @ params["w1"] + params["b1"], 0.0)
    h = jnp.maximum(h @ params["w2"] + params["b2"], 0.0)
    h = jnp.maximum(h @ params["w3"] + params["b3"], 0.0)
    policy = jax.nn.softmax(h @ params["wp"] + params["bp"], axis=-1)
    value = jnp.tanh(h @ params["wv"] + params["bv"])
    return policy, value


if __name__ == "__main__":
    INPUT_DIM = 32
    OUTPUT_DIM = 16
    BATCH = 8

    key = jax.random.PRNGKey(0)
    k_x, k_p = jax.random.split(key)
    x = jax.random.normal(k_x, (BATCH, INPUT_DIM), jnp.float32)
    params = init_params(k_p, INPUT_DIM, OUTPUT_DIM)

    packed = pack_params(params)          # done once; reuse across calls
    policy, value = net_forward(x, packed)
    policy = jax.block_until_ready(policy)
    value = jax.block_until_ready(value)

    # Shape / structural sanity checks.
    assert policy.shape == (BATCH, OUTPUT_DIM)
    assert value.shape == (BATCH, 1)
    # bf16 output + approx reciprocal -> simplex holds to ~1e-2.
    assert jnp.allclose(jnp.sum(policy, axis=-1), 1.0, atol=2e-2)
    assert jnp.all(jnp.abs(value) <= 1.0)

    # Numerical check vs the f32 reference (bf16 weights/IO -> loose tolerance).
    ref_policy, ref_value = net_reference(x, params)
    assert jnp.allclose(policy, ref_policy, atol=5e-2)
    assert jnp.allclose(value, ref_value, atol=5e-2)

    print("KERNEL_OK")
</pallas_src>

<mosaic_0001>
module attributes {stable_mosaic.version = 11 : i64} {
  func.func @net_kernel(%arg0: i32, %arg1: memref<8x32xf32, #tpu.memory_space<vmem>>, %arg2: memref<32x256xbf16, #tpu.memory_space<vmem>>, %arg3: memref<1x256xf32, #tpu.memory_space<vmem>>, %arg4: memref<256x256xbf16, #tpu.memory_space<vmem>>, %arg5: memref<1x256xf32, #tpu.memory_space<vmem>>, %arg6: memref<256x256xbf16, #tpu.memory_space<vmem>>, %arg7: memref<1x256xf32, #tpu.memory_space<vmem>>, %arg8: memref<256x128xbf16, #tpu.memory_space<vmem>>, %arg9: memref<1x128xf32, #tpu.memory_space<vmem>>, %arg10: memref<8x128xbf16, #tpu.memory_space<vmem>>) attributes {dimension_semantics = [#tpu.dimension_semantics<parallel>], iteration_bounds = array<i64: 1>, scalar_prefetch = 0 : i64, scratch_operands = 0 : i64, tpu.core_type = #tpu.core_type<tc>, window_params = [{transform_indices = @transform_0, window_bounds = array<i64: 8, 32>}, {pipeline_mode = #tpu.pipeline_mode<synchronous>, transform_indices = @transform_1, window_bounds = array<i64: 32, 256>}, {pipeline_mode = #tpu.pipeline_mode<synchronous>, transform_indices = @transform_2, window_bounds = array<i64: 1, 256>}, {pipeline_mode = #tpu.pipeline_mode<synchronous>, transform_indices = @transform_3, window_bounds = array<i64: 256, 256>}, {pipeline_mode = #tpu.pipeline_mode<synchronous>, transform_indices = @transform_4, window_bounds = array<i64: 1, 256>}, {pipeline_mode = #tpu.pipeline_mode<synchronous>, transform_indices = @transform_5, window_bounds = array<i64: 256, 256>}, {pipeline_mode = #tpu.pipeline_mode<synchronous>, transform_indices = @transform_6, window_bounds = array<i64: 1, 256>}, {pipeline_mode = #tpu.pipeline_mode<synchronous>, transform_indices = @transform_7, window_bounds = array<i64: 256, 128>}, {pipeline_mode = #tpu.pipeline_mode<synchronous>, transform_indices = @transform_8, window_bounds = array<i64: 1, 128>}, {transform_indices = @transform_9, window_bounds = array<i64: 8, 128>}]} {
    %c0 = arith.constant 0 : index
    %c0_0 = arith.constant 0 : index
    %0 = vector.load %arg1[%c0, %c0_0] : memref<8x32xf32, #tpu.memory_space<vmem>>, vector<8x32xf32>
    %1 = arith.truncf %0 : vector<8x32xf32> to vector<8x32xbf16>
    %c0_1 = arith.constant 0 : index
    %c0_2 = arith.constant 0 : index
    %2 = vector.load %arg2[%c0_1, %c0_2] : memref<32x256xbf16, #tpu.memory_space<vmem>>, vector<32x256xbf16>
    %cst = arith.constant dense<0.000000e+00> : vector<8x256xf32>
    %3 = tpu.matmul %1, %2, %cst {dimension_numbers = #tpu.dot_dimension_numbers<[1], [0], [0], [1], [0, 0, 1, 1], [], []>} : vector<8x32xbf16>, vector<32x256xbf16>, vector<8x256xf32> -> vector<8x256xf32>
    %c0_3 = arith.constant 0 : index
    %c0_4 = arith.constant 0 : index
    %4 = vector.load %arg3[%c0_3, %c0_4] : memref<1x256xf32, #tpu.memory_space<vmem>>, vector<1x256xf32>
    %5 = vector.broadcast %4 : vector<1x256xf32> to vector<8x256xf32>
    %6 = arith.addf %3, %5 : vector<8x256xf32>
    %cst_5 = arith.constant 0.000000e+00 : f32
    %7 = vector.broadcast %cst_5 : f32 to vector<8x256xf32>
    %8 = arith.maximumf %6, %7 : vector<8x256xf32>
    %9 = arith.truncf %8 : vector<8x256xf32> to vector<8x256xbf16>
    %c0_6 = arith.constant 0 : index
    %c0_7 = arith.constant 0 : index
    %10 = vector.load %arg4[%c0_6, %c0_7] : memref<256x256xbf16, #tpu.memory_space<vmem>>, vector<256x256xbf16>
    %cst_8 = arith.constant dense<0.000000e+00> : vector<8x256xf32>
    %11 = tpu.matmul %9, %10, %cst_8 {dimension_numbers = #tpu.dot_dimension_numbers<[1], [0], [0], [1], [0, 0, 1, 1], [], []>} : vector<8x256xbf16>, vector<256x256xbf16>, vector<8x256xf32> -> vector<8x256xf32>
    %c0_9 = arith.constant 0 : index
    %c0_10 = arith.constant 0 : index
    %12 = vector.load %arg5[%c0_9, %c0_10] : memref<1x256xf32, #tpu.memory_space<vmem>>, vector<1x256xf32>
    %13 = vector.broadcast %12 : vector<1x256xf32> to vector<8x256xf32>
    %14 = arith.addf %11, %13 : vector<8x256xf32>
    %cst_11 = arith.constant 0.000000e+00 : f32
    %15 = vector.broadcast %cst_11 : f32 to vector<8x256xf32>
    %16 = arith.maximumf %14, %15 : vector<8x256xf32>
    %17 = arith.truncf %16 : vector<8x256xf32> to vector<8x256xbf16>
    %c0_12 = arith.constant 0 : index
    %c0_13 = arith.constant 0 : index
    %18 = vector.load %arg6[%c0_12, %c0_13] : memref<256x256xbf16, #tpu.memory_space<vmem>>, vector<256x256xbf16>
    %cst_14 = arith.constant dense<0.000000e+00> : vector<8x256xf32>
    %19 = tpu.matmul %17, %18, %cst_14 {dimension_numbers = #tpu.dot_dimension_numbers<[1], [0], [0], [1], [0, 0, 1, 1], [], []>} : vector<8x256xbf16>, vector<256x256xbf16>, vector<8x256xf32> -> vector<8x256xf32>
    %c0_15 = arith.constant 0 : index
    %c0_16 = arith.constant 0 : index
    %20 = vector.load %arg7[%c0_15, %c0_16] : memref<1x256xf32, #tpu.memory_space<vmem>>, vector<1x256xf32>
    %21 = vector.broadcast %20 : vector<1x256xf32> to vector<8x256xf32>
    %22 = arith.addf %19, %21 : vector<8x256xf32>
    %cst_17 = arith.constant 0.000000e+00 : f32
    %23 = vector.broadcast %cst_17 : f32 to vector<8x256xf32>
    %24 = arith.maximumf %22, %23 : vector<8x256xf32>
    %25 = arith.truncf %24 : vector<8x256xf32> to vector<8x256xbf16>
    %c0_18 = arith.constant 0 : index
    %c0_19 = arith.constant 0 : index
    %26 = vector.load %arg8[%c0_18, %c0_19] : memref<256x128xbf16, #tpu.memory_space<vmem>>, vector<256x128xbf16>
    %cst_20 = arith.constant dense<0.000000e+00> : vector<8x128xf32>
    %27 = tpu.matmul %25, %26, %cst_20 {dimension_numbers = #tpu.dot_dimension_numbers<[1], [0], [0], [1], [0, 0, 1, 1], [], []>} : vector<8x256xbf16>, vector<256x128xbf16>, vector<8x128xf32> -> vector<8x128xf32>
    %c0_21 = arith.constant 0 : index
    %c0_22 = arith.constant 0 : index
    %28 = vector.load %arg9[%c0_21, %c0_22] : memref<1x128xf32, #tpu.memory_space<vmem>>, vector<1x128xf32>
    %29 = vector.broadcast %28 : vector<1x128xf32> to vector<8x128xf32>
    %30 = arith.addf %27, %29 : vector<8x128xf32>
    %31 = tpu.iota {dimensions = array<i32: 1>} : vector<8x128xi32>
    %c16_i32 = arith.constant 16 : i32
    %32 = vector.broadcast %c16_i32 : i32 to vector<8x128xi32>
    %33 = arith.cmpi slt, %31, %32 : vector<8x128xi32>
    %c16_i32_23 = arith.constant 16 : i32
    %34 = vector.broadcast %c16_i32_23 : i32 to vector<8x128xi32>
    %35 = arith.cmpi eq, %31, %34 : vector<8x128xi32>
    %36 = vector.extract_strided_slice %30 {offsets = [0, 0], sizes = [8, 16], strides = [1, 1]} : vector<8x128xf32> to vector<8x16xf32>
    %cst_24 = arith.constant dense<0xFF800000> : vector<8xf32>
    %37 = vector.multi_reduction <maximumf>, %36, %cst_24 [1] : vector<8x16xf32> to vector<8xf32>
    %38 = vector.shape_cast %37 : vector<8xf32> to vector<8x1xf32>
    %39 = vector.broadcast %38 : vector<8x1xf32> to vector<8x128xf32>
    %40 = arith.subf %30, %39 : vector<8x128xf32>
    %41 = math.exp %40 : vector<8x128xf32>
    %cst_25 = arith.constant 0.000000e+00 : f32
    %42 = vector.broadcast %cst_25 : f32 to vector<8x128xf32>
    %43 = arith.select %33, %41, %42 : vector<8x128xi1>, vector<8x128xf32>
    %cst_26 = arith.constant dense<0.000000e+00> : vector<8xf32>
    %44 = vector.multi_reduction <add>, %43, %cst_26 [1] : vector<8x128xf32> to vector<8xf32>
    %45 = vector.shape_cast %44 : vector<8xf32> to vector<8x1xf32>
    %46 = tpu.reciprocal %45 {approx = true} : vector<8x1xf32> -> vector<8x1xf32>
    %47 = vector.broadcast %46 : vector<8x1xf32> to vector<8x128xf32>
    %48 = arith.mulf %43, %47 : vector<8x128xf32>
    %49 = vector.extract_strided_slice %30 {offsets = [0, 16], sizes = [8, 1], strides = [1, 1]} : vector<8x128xf32> to vector<8x1xf32>
    %50 = math.tanh %49 : vector<8x1xf32>
    %51 = vector.shape_cast %50 : vector<8x1xf32> to vector<8x1xf32>
    %52 = vector.broadcast %51 : vector<8x1xf32> to vector<8x128xf32>
    %53 = arith.select %35, %52, %48 : vector<8x128xi1>, vector<8x128xf32>
    %54 = arith.truncf %53 : vector<8x128xf32> to vector<8x128xbf16>
    %c0_27 = arith.constant 0 : index
    %c0_28 = arith.constant 0 : index
    %55 = vector.load %arg10[%c0_27, %c0_28] : memref<8x128xbf16, #tpu.memory_space<vmem>>, vector<8x128xbf16>
    tpu.vector_store %arg10[%c0_27, %c0_28], %54 {strides = array<i32>} : memref<8x128xbf16, #tpu.memory_space<vmem>>, vector<8x128xbf16>,
    return
  }
  func.func @transform_0(%arg0: i32) -> (i32, i32) {
    %c0_i32 = arith.constant 0 : i32
    %c0_i32_0 = arith.constant 0 : i32
    return %arg0, %c0_i32 : i32, i32
  }
  func.func @transform_1(%arg0: i32) -> (i32, i32) {
    %c0_i32 = arith.constant 0 : i32
    %c0_i32_0 = arith.constant 0 : i32
    %c0_i32_1 = arith.constant 0 : i32
    return %c0_i32, %c0_i32_0 : i32, i32
  }
  func.func @transform_2(%arg0: i32) -> (i32, i32) {
    %c0_i32 = arith.constant 0 : i32
    %c0_i32_0 = arith.constant 0 : i32
    %c0_i32_1 = arith.constant 0 : i32
    return %c0_i32, %c0_i32_0 : i32, i32
  }
  func.func @transform_3(%arg0: i32) -> (i32, i32) {
    %c0_i32 = arith.constant 0 : i32
    %c0_i32_0 = arith.constant 0 : i32
    %c0_i32_1 = arith.constant 0 : i32
    return %c0_i32, %c0_i32_0 : i32, i32
  }
  func.func @transform_4(%arg0: i32) -> (i32, i32) {
    %c0_i32 = arith.constant 0 : i32
    %c0_i32_0 = arith.constant 0 : i32
    %c0_i32_1 = arith.constant 0 : i32
    return %c0_i32, %c0_i32_0 : i32, i32
  }
  func.func @transform_5(%arg0: i32) -> (i32, i32) {
    %c0_i32 = arith.constant 0 : i32
    %c0_i32_0 = arith.constant 0 : i32
    %c0_i32_1 = arith.constant 0 : i32
    return %c0_i32, %c0_i32_0 : i32, i32
  }
  func.func @transform_6(%arg0: i32) -> (i32, i32) {
    %c0_i32 = arith.constant 0 : i32
    %c0_i32_0 = arith.constant 0 : i32
    %c0_i32_1 = arith.constant 0 : i32
    return %c0_i32, %c0_i32_0 : i32, i32
  }
  func.func @transform_7(%arg0: i32) -> (i32, i32) {
    %c0_i32 = arith.constant 0 : i32
    %c0_i32_0 = arith.constant 0 : i32
    %c0_i32_1 = arith.constant 0 : i32
    return %c0_i32, %c0_i32_0 : i32, i32
  }
  func.func @transform_8(%arg0: i32) -> (i32, i32) {
    %c0_i32 = arith.constant 0 : i32
    %c0_i32_0 = arith.constant 0 : i32
    %c0_i32_1 = arith.constant 0 : i32
    return %c0_i32, %c0_i32_0 : i32, i32
  }
  func.func @transform_9(%arg0: i32) -> (i32, i32) {
    %c0_i32 = arith.constant 0 : i32
    %c0_i32_0 = arith.constant 0 : i32
    return %arg0, %c0_i32 : i32, i32
  }
}

</mosaic_0001>

<bundles_post_ra>
// kernel: tpu_custom_call.1
= control target key start
LH: loop header
LB: loop body
LE: loop exit
PB: predicated region body
PF: predicated region fallthrough
CT: control target
= control target key end

     0   :  { %14 = vsyncpa [#allocation3], 0  ;;  %s1455_s0 = inlined_call_operand.hbm [shape: f32[8,32], index: 0, kind: input, shape index: {}]   ;;  %s1456_s1 = inlined_call_operand.hbm [shape: bf16[32,256], index: 1, kind: input, shape index: {}]   ;;  %s1457_s2 = inlined_call_operand.vmem [shape: f32[1,256], index: 2, kind: input, shape index: {}]   ;;  %s1458_s3 = inlined_call_operand.hbm [shape: bf16[256,256], index: 3, kind: input, shape index: {}]   ;;  %s1459_s4 = inlined_call_operand.vmem [shape: f32[1,256], index: 4, kind: input, shape index: {}]   ;;  %s1460_s5 = inlined_call_operand.hbm [shape: bf16[256,256], index: 5, kind: input, shape index: {}]   ;;  %s1461_s6 = inlined_call_operand.vmem [shape: f32[1,256], index: 6, kind: input, shape index: {}]   ;;  %s1462_s7 = inlined_call_operand.hbm [shape: bf16[256,128], index: 7, kind: input, shape index: {}]   ;;  %s1463_s8 = inlined_call_operand.vmem [shape: f32[1,128], index: 8, kind: input, shape index: {}]   ;;  %s1464_s9 = inlined_call_operand.hbm [shape: bf16[8,128], index: 9, kind: output, shape index: {}]  }
   0x1   :  { %15 = vsyncpa [#allocation6], 0 }
   0x2   :  { %16 = vsyncpa [#allocation9], 0 }
   0x3   :  { %17 = vsyncpa [#allocation4], 0  ;;  %s1288_s30 = smov [#allocation5]   ;;  %s1148_s13 = scalar_lea.hbm %s1456_s1, 512 }
   0x4   :  { %s33_s10 = sshll.u32 %s1288_s30, 4  ;;  %p1149_p0 = scmp.ne.s32.totalorder %s1456_s1, %s1148_s13  ;;  %s34_s10 = int_to_ptr.vmem [resolvable:$true] %s33_s10 }
   0x5   :  { %p1152_p1 = scmp.lt.u32.totalorder %s1148_s13, %s1456_s1 }
   0x7   :  { %p1154_p2 = pnand %p1152_p1, %p1149_p0 }
   0x9   :  { %1157 = shalt.err (!%p1154_p2)
}
   0xa   :  { %s1158_s18 = scalar_lea.vmem %s34_s10, 512  ;;  %p1163_p4 = scmp.lt.s32.totalorder %s34_s10, %s34_s10 }
   0xb   :  { %p1159_p3 = scmp.ne.s32.totalorder %s34_s10, %s1158_s18  ;;  %p1164_p5 = scmp.lt.s32.totalorder %s1158_s18, %s1158_s18 }
   0xd   :  { %p1165_p6 = por %p1164_p5, %p1163_p4 }
   0xf   :  { %p1166_p7 = pnand %p1165_p6, %p1159_p3 }
  0x11   :  { %1169 = shalt.err (!%p1166_p7)
}
  0x12   :  { %s1289_s19 = smov 128   ;;  %s1290_s20 = smov 8  }
  0x13   :  { %39 = dma.hbm_to_vmem [thread:$0]  %s1456_s1, 512, %s34_s10, [#allocation6], %s1289_s19, %s1289_s19, %s1290_s20  }
  0x14   :  { %s1291_s23 = smov [#allocation8]   ;;  %s1292_s25 = smov [#allocation2]  }
  0x15   :  { %s61_s24 = sshll.u32 %s1291_s23, 4  ;;  %s24_s26 = sshll.u32 %s1292_s25, 4  ;;  %s62_s24 = int_to_ptr.vmem [resolvable:$true] %s61_s24  ;;  %s25_s26 = int_to_ptr.vmem [resolvable:$true] %s24_s26 }
  0x16   :  { %s1170_s29 = scalar_lea.hbm %s1460_s5, 4096 }
  0x17   :  { %p1171_p8 = scmp.ne.s32.totalorder %s1460_s5, %s1170_s29  ;;  %p1174_p9 = scmp.lt.u32.totalorder %s1170_s29, %s1460_s5 }
  0x19   :  { %p1176_p10 = pnand %p1174_p9, %p1171_p8 }
  0x1b   :  { %1179 = shalt.err (!%p1176_p10)
}
  0x1c   :  { %s1180_s1 = scalar_lea.vmem %s62_s24, 4096  ;;  %p1185_p12 = scmp.lt.s32.totalorder %s62_s24, %s62_s24 }
  0x1d   :  { %p1181_p11 = scmp.ne.s32.totalorder %s62_s24, %s1180_s1  ;;  %p1186_p13 = scmp.lt.s32.totalorder %s1180_s1, %s1180_s1 }
  0x1f   :  { %p1187_p0 = por %p1186_p13, %p1185_p12 }
  0x21   :  { %p1188_p1 = pnand %p1187_p0, %p1181_p11 }
  0x23   :  { %1191 = shalt.err (!%p1188_p1)
}
  0x24   :  { %67 = dma.hbm_to_vmem [thread:$0]  %s1460_s5, 4096, %s62_s24, [#allocation9], %s1289_s19, %s1289_s19, %s1290_s20  }
  0x25   :  { %s1192_s17 = scalar_lea.hbm %s1455_s0, 128 }
  0x26   :  { %p1193_p2 = scmp.ne.s32.totalorder %s1455_s0, %s1192_s17  ;;  %p1196_p3 = scmp.lt.u32.totalorder %s1192_s17, %s1455_s0 }
  0x28   :  { %p1198_p4 = pnand %p1196_p3, %p1193_p2 }
  0x2a   :  { %1201 = shalt.err (!%p1198_p4)
}
  0x2b   :  { %s1202_s25 = scalar_lea.vmem %s25_s26, 128  ;;  %p1207_p6 = scmp.lt.s32.totalorder %s25_s26, %s25_s26 }
  0x2c   :  { %p1203_p5 = scmp.ne.s32.totalorder %s25_s26, %s1202_s25  ;;  %p1208_p7 = scmp.lt.s32.totalorder %s1202_s25, %s1202_s25 }
  0x2e   :  { %p1209_p8 = por %p1208_p7, %p1207_p6 }
  0x30   :  { %p1210_p9 = pnand %p1209_p8, %p1203_p5 }
  0x32   :  { %1213 = shalt.err (!%p1210_p9)
}
  0x33   :  { %27 = dma.hbm_to_vmem [thread:$0]  %s1455_s0, 128, %s25_s26, [#allocation3]  }
  0x34   :  { %s1293_s27 = smov [#allocation7]   ;;  %s1294_s29 = smov [#allocation10]  }
  0x35   :  { %s47_s28 = sshll.u32 %s1293_s27, 4  ;;  %s75_s30 = sshll.u32 %s1294_s29, 4  ;;  %s48_s28 = int_to_ptr.vmem [resolvable:$true] %s47_s28  ;;  %s76_s30 = int_to_ptr.vmem [resolvable:$true] %s75_s30 }
  0x36   :  { %s1214_s13 = scalar_lea.hbm %s1458_s3, 4096 }
  0x37   :  { %p1215_p10 = scmp.ne.s32.totalorder %s1458_s3, %s1214_s13  ;;  %p1218_p11 = scmp.lt.u32.totalorder %s1214_s13, %s1458_s3 }
  0x39   :  { %p1220_p12 = pnand %p1218_p11, %p1215_p10 }
  0x3b   :  { %1223 = shalt.err (!%p1220_p12)
}
  0x3c   :  { %s1224_s0 = scalar_lea.vmem %s48_s28, 4096  ;;  %p1229_p0 = scmp.lt.s32.totalorder %s48_s28, %s48_s28 }
  0x3d   :  { %p1225_p13 = scmp.ne.s32.totalorder %s48_s28, %s1224_s0  ;;  %p1230_p1 = scmp.lt.s32.totalorder %s1224_s0, %s1224_s0 }
  0x3f   :  { %p1231_p2 = por %p1230_p1, %p1229_p0 }
  0x41   :  { %p1232_p3 = pnand %p1231_p2, %p1225_p13 }
  0x43   :  { %1235 = shalt.err (!%p1232_p3)
}
  0x44   :  { %53 = dma.hbm_to_vmem [thread:$0]  %s1458_s3, 4096, %s48_s28, [#allocation6], %s1289_s19, %s1289_s19, %s1290_s20  }
  0x45   :  { %s1236_s21 = scalar_lea.hbm %s1462_s7, 2048 }
  0x46   :  { %p1237_p4 = scmp.ne.s32.totalorder %s1462_s7, %s1236_s21  ;;  %p1240_p5 = scmp.lt.u32.totalorder %s1236_s21, %s1462_s7 }
  0x48   :  { %p1242_p6 = pnand %p1240_p5, %p1237_p4 }
  0x4a   :  { %1245 = shalt.err (!%p1242_p6)
}
  0x4b   :  { %s1246_s24 = scalar_lea.vmem %s76_s30, 2048  ;;  %p1251_p8 = scmp.lt.s32.totalorder %s76_s30, %s76_s30 }
  0x4c   :  { %p1247_p7 = scmp.ne.s32.totalorder %s76_s30, %s1246_s24  ;;  %p1252_p9 = scmp.lt.s32.totalorder %s1246_s24, %s1246_s24 }
  0x4e   :  { %p1253_p10 = por %p1252_p9, %p1251_p8 }
  0x50   :  { %p1254_p11 = pnand %p1253_p10, %p1247_p7 }
  0x52   :  { %1257 = shalt.err (!%p1254_p11)
}
  0x53   :  { %s1295_s3 = smov 64   ;;  %s1296_s19 = smov 4  }
  0x54   :  { %81 = dma.hbm_to_vmem [thread:$0]  %s1462_s7, 2048, %s76_s30, [#allocation9], %s1295_s3, %s1295_s3, %s1296_s19  }
  0x55   :  { %1280 = dma.done.wait [#allocation3], 128  }
  0x56   :  { %1281 = vsyncadd [#allocation3], 4294967168 }
  0x57   :  { %1282 = dma.done.wait [#allocation6], 4608  }
  0x58   :  { %1283 = vsyncadd [#allocation6], 4294962688 }
  0x59   :  { %1284 = dma.done.wait [#allocation9], 6144  }
  0x5a   :  { %1285 = vsyncadd [#allocation9], 4294961152  ;;  %v1297_v0 = vmov 0   ;;  %v1024_v1 = vld [vmem:[#allocation5 + $0x4] ss:$8 sps:$4 sm:$0xff]   ;;  %v100_v5 = vld [vmem:[#allocation2] sm:$0xff] }
  0x5b   :  { %174 = vmatprep.mubr.bf16.mxu0 %v1297_v0  ;;  %v1026_v2 = vld [vmem:[#allocation5] ss:$8 sps:$4 sm:$0xff]   ;;  %142 = vmatprep.subr.bf16.mxu0 %v1024_v1  ;;  %v1027_v3 = vld [vmem:[#allocation5 + $0x14] ss:$8 sps:$4 sm:$0xff]   ;;  %v1029_v4 = vld [vmem:[#allocation5 + $0x10] ss:$8 sps:$4 sm:$0xff]   ;;  %v101_v9 = vpack.c.bf16 %v100_v5, %v100_v5 }
  0x5c   :  { %143 = vmatpush1.bf16.msra.mxu0 %v1026_v2  ;;  %v1030_v6 = vld [vmem:[#allocation7 + $0x4] ss:$8 sps:$4 sm:$0xff]   ;;  %v1032_v7 = vld [vmem:[#allocation7] ss:$8 sps:$4 sm:$0xff]   ;;  %v1033_v8 = vld [vmem:[#allocation7 + $0x14] ss:$8 sps:$4 sm:$0xff]  }
  0x5d   :  { %144 = vmatprep.subr.bf16.mxu0 %v1027_v3  ;;  %391 = vmatprep.subr.bf16.mxu1 %v1030_v6  ;;  %v1035_v10 = vld [vmem:[#allocation7 + $0x10] ss:$8 sps:$4 sm:$0xff]   ;;  %vm138_vm0 = vcmask 261120   ;;  %v1036_v11 = vld [vmem:[#allocation7 + $0x24] ss:$8 sps:$4 sm:$0xff]   ;;  %v108_v3 = vlaneseq  ;;  %vm864_vm1 = vcmask 130048  }
  0x5e   :  { %392 = vmatpush1.bf16.msra.mxu1 %v1032_v7  ;;  %v1038_v12 = vld [vmem:[#allocation7 + $0x20] ss:$8 sps:$4 sm:$0xff]   ;;  %v1039_v13 = vld [vmem:[#allocation7 + $0x34] ss:$8 sps:$4 sm:$0xff]   ;;  %v1041_v14 = vld [vmem:[#allocation7 + $0x30] ss:$8 sps:$4 sm:$0xff]  }
  0x5f   :  { %393 = vmatprep.subr.bf16.mxu1 %v1033_v8  ;;  %v1042_v15 = vld [vmem:[#allocation7 + $0x44] ss:$8 sps:$4 sm:$0xff]   ;;  %v1044_v16 = vld [vmem:[#allocation7 + $0x40] ss:$8 sps:$4 sm:$0xff]   ;;  %v1045_v17 = vld [vmem:[#allocation7 + $0x54] ss:$8 sps:$4 sm:$0xff]  }
  0x60   :  { %145 = vmatpush1.bf16.msra.mxu0 %v1029_v4  ;;  %v1047_v18 = vld [vmem:[#allocation7 + $0x50] ss:$8 sps:$4 sm:$0xff]   ;;  %v1048_v19 = vld [vmem:[#allocation7 + $0x64] ss:$8 sps:$4 sm:$0xff]   ;;  %v1050_v20 = vld [vmem:[#allocation7 + $0x60] ss:$8 sps:$4 sm:$0xff]  }
  0x61   :  { %v1051_v21 = vld [vmem:[#allocation7 + $0x74] ss:$8 sps:$4 sm:$0xff]   ;;  %v1053_v22 = vld [vmem:[#allocation7 + $0x70] ss:$8 sps:$4 sm:$0xff]   ;;  %v1054_v23 = vld [vmem:[#allocation7 + $0x84] ss:$8 sps:$4 sm:$0xff]  }
  0x62   :  { %394 = vmatpush1.bf16.msra.mxu1 %v1035_v10  ;;  %v1056_v24 = vld [vmem:[#allocation7 + $0x80] ss:$8 sps:$4 sm:$0xff]   ;;  %v1057_v25 = vld [vmem:[#allocation7 + $0x94] ss:$8 sps:$4 sm:$0xff]   ;;  %v1059_v26 = vld [vmem:[#allocation7 + $0x90] ss:$8 sps:$4 sm:$0xff]  }
  0x63   :  { %906 = vmatmul.mubr.msk.bf16.vlgmr.msra.gmra.mrb[0].mxu0 %vm138_vm0, %v101_v9  ;;  %395 = vmatprep.subr.bf16.mxu1 %v1036_v11  ;;  %v1060_v27 = vld [vmem:[#allocation7 + $0xa4] ss:$8 sps:$4 sm:$0xff]   ;;  %v1062_v28 = vld [vmem:[#allocation7 + $0xa0] ss:$8 sps:$4 sm:$0xff]   ;;  %v1063_v29 = vld [vmem:[#allocation7 + $0xb4] ss:$8 sps:$4 sm:$0xff]  }
  0x64   :  { %v1065_v30 = vld [vmem:[#allocation7 + $0xb0] ss:$8 sps:$4 sm:$0xff]   ;;  %v1066_v31 = vld [vmem:[#allocation7 + $0xc4] ss:$8 sps:$4 sm:$0xff]   ;;  %v1068_v32 = vld [vmem:[#allocation7 + $0xc0] ss:$8 sps:$4 sm:$0xff]  }
  0x65   :  { %v1069_v33 = vld [vmem:[#allocation7 + $0xd4] ss:$8 sps:$4 sm:$0xff]   ;;  %v1071_v34 = vld [vmem:[#allocation7 + $0xd0] ss:$8 sps:$4 sm:$0xff]   ;;  %v1072_v35 = vld [vmem:[#allocation7 + $0xe4] ss:$8 sps:$4 sm:$0xff]  }
  0x66   :  { %396 = vmatpush1.bf16.msra.mxu1 %v1038_v12  ;;  %v1074_v36 = vld [vmem:[#allocation7 + $0xe0] ss:$8 sps:$4 sm:$0xff]   ;;  %v1075_v37 = vld [vmem:[#allocation7 + $0xf4] ss:$8 sps:$4 sm:$0xff]   ;;  %v1077_v38 = vld [vmem:[#allocation7 + $0xf0] ss:$8 sps:$4 sm:$0xff]  }
  0x67   :  { %397 = vmatprep.subr.bf16.mxu1 %v1039_v13  ;;  %v1078_v39 = vld [vmem:[#allocation8] ss:$8 sps:$4 sm:$0xff]   ;;  %v1080_v40 = vld [vmem:[#allocation8 + $0x4] ss:$8 sps:$4 sm:$0xff]   ;;  %v1083_v41 = vld [vmem:[#allocation8 + $0x14] ss:$8 sps:$4 sm:$0xff]  }
  0x68   :  { %640 = vmatprep.subr.bf16.mxu0 %v1080_v40  ;;  %v1081_v42 = vld [vmem:[#allocation8 + $0x10] ss:$8 sps:$4 sm:$0xff]   ;;  %v1086_v43 = vld [vmem:[#allocation8 + $0x24] ss:$8 sps:$4 sm:$0xff]   ;;  %v1084_v44 = vld [vmem:[#allocation8 + $0x20] ss:$8 sps:$4 sm:$0xff]  }
  0x69   :  { %641 = vmatpush1.bf16.msra.mxu0 %v1078_v39  ;;  %v1089_v45 = vld [vmem:[#allocation8 + $0x34] ss:$8 sps:$4 sm:$0xff]   ;;  %v1087_v46 = vld [vmem:[#allocation8 + $0x30] ss:$8 sps:$4 sm:$0xff]   ;;  %v1092_v47 = vld [vmem:[#allocation8 + $0x44] ss:$8 sps:$4 sm:$0xff]  }
  0x6a   :  { %398 = vmatpush1.bf16.msra.mxu1 %v1041_v14  ;;  %642 = vmatprep.subr.bf16.mxu0 %v1083_v41  ;;  %v1090_v48 = vld [vmem:[#allocation8 + $0x40] ss:$8 sps:$4 sm:$0xff]   ;;  %v1095_v49 = vld [vmem:[#allocation8 + $0x54] ss:$8 sps:$4 sm:$0xff]   ;;  %v1093_v50 = vld [vmem:[#allocation8 + $0x50] ss:$8 sps:$4 sm:$0xff]  }
  0x6b   :  { %399 = vmatprep.subr.bf16.mxu1 %v1042_v15  ;;  %v1098_v51 = vld [vmem:[#allocation8 + $0x64] ss:$8 sps:$4 sm:$0xff]   ;;  %v1096_v52 = vld [vmem:[#allocation8 + $0x60] ss:$8 sps:$4 sm:$0xff]   ;;  %v1101_v53 = vld [vmem:[#allocation8 + $0x74] ss:$8 sps:$4 sm:$0xff]  }
  0x6c   :  { %v1099_v54 = vld [vmem:[#allocation8 + $0x70] ss:$8 sps:$4 sm:$0xff]   ;;  %v1104_v55 = vld [vmem:[#allocation8 + $0x84] ss:$8 sps:$4 sm:$0xff]   ;;  %v1102_v56 = vld [vmem:[#allocation8 + $0x80] ss:$8 sps:$4 sm:$0xff]  }
  0x6d   :  { %643 = vmatpush1.bf16.msra.mxu0 %v1081_v42  ;;  %v1107_v57 = vld [vmem:[#allocation8 + $0x94] ss:$8 sps:$4 sm:$0xff]   ;;  %v1105_v58 = vld [vmem:[#allocation8 + $0x90] ss:$8 sps:$4 sm:$0xff]   ;;  %v1110_v59 = vld [vmem:[#allocation8 + $0xa4] ss:$8 sps:$4 sm:$0xff]  }
  0x6e   :  { %400 = vmatpush1.bf16.msra.mxu1 %v1044_v16  ;;  %644 = vmatprep.subr.bf16.mxu0 %v1086_v43  ;;  %v1108_v60 = vld [vmem:[#allocation8 + $0xa0] ss:$8 sps:$4 sm:$0xff]   ;;  %v1113_v61 = vld [vmem:[#allocation8 + $0xb4] ss:$8 sps:$4 sm:$0xff]   ;;  %v1111_v62 = vld [vmem:[#allocation8 + $0xb0] ss:$8 sps:$4 sm:$0xff]  }
  0x6f   :  { %401 = vmatprep.subr.bf16.mxu1 %v1045_v17  ;;  %v1116_v63 = vld [vmem:[#allocation8 + $0xc4] ss:$8 sps:$4 sm:$0xff]   ;;  %v1114_v0 = vld [vmem:[#allocation8 + $0xc0] ss:$8 sps:$4 sm:$0xff]   ;;  %v1119_v1 = vld [vmem:[#allocation8 + $0xd4] ss:$8 sps:$4 sm:$0xff]  }
  0x70   :  { %v1117_v2 = vld [vmem:[#allocation8 + $0xd0] ss:$8 sps:$4 sm:$0xff]   ;;  %v109_v4 = vshrl.u32 %v108_v3, 7 }
  0x71   :  { %645 = vmatpush1.bf16.msra.mxu0 %v1084_v44  ;;  %v106_v6 = vld [vmem:[%s1457_s2] sm:$0x3] }
  0x72   :  { %402 = vmatpush1.bf16.msra.mxu1 %v1047_v18  ;;  %646 = vmatprep.subr.bf16.mxu0 %v1089_v45  ;;  %v1420_v5 = vsub.s32 0, %v109_v4  ;;  %v1425_v7 = vsub.s32 1, %v109_v4 }
  0x73   :  { %403 = vmatprep.subr.bf16.mxu1 %v1048_v19 }
  0x74   :  { %v111_v8 = vrot.slane %v106_v6, %v1420_v5  ;;  %v115_v9 = vrot.slane %v106_v6, %v1425_v7 }
  0x75   :  { %647 = vmatpush1.bf16.msra.mxu0 %v1087_v46 }
  0x76   :  { %404 = vmatpush1.bf16.msra.mxu1 %v1050_v20  ;;  %648 = vmatprep.subr.bf16.mxu0 %v1092_v47  ;;  %v1122_v20 = vld [vmem:[#allocation8 + $0xe4] ss:$8 sps:$4 sm:$0xff]  }
  0x77   :  { %405 = vmatprep.subr.bf16.mxu1 %v1051_v21  ;;  %v1120_v21 = vld [vmem:[#allocation8 + $0xe0] ss:$8 sps:$4 sm:$0xff]  }
  0x79   :  { %649 = vmatpush1.bf16.msra.mxu0 %v1090_v48 }
  0x7a   :  { %406 = vmatpush1.bf16.msra.mxu1 %v1053_v22  ;;  %650 = vmatprep.subr.bf16.mxu0 %v1095_v49  ;;  %v1125_v22 = vld [vmem:[#allocation8 + $0xf4] ss:$8 sps:$4 sm:$0xff]  }
  0x7b   :  { %407 = vmatprep.subr.bf16.mxu1 %v1054_v23  ;;  %v1123_v23 = vld [vmem:[#allocation8 + $0xf0] ss:$8 sps:$4 sm:$0xff]  }
  0x7c   :  { %v1138_v49 = vld [vmem:[#allocation10 + $0x70] sm:$0xff]  }
  0x7d   :  { %651 = vmatpush1.bf16.msra.mxu0 %v1093_v50  ;;  %v1139_v50 = vld [vmem:[#allocation10 + $0x30] sm:$0xff]  }
  0x7e   :  { %408 = vmatpush1.bf16.msra.mxu1 %v1056_v24  ;;  %652 = vmatprep.subr.bf16.mxu0 %v1098_v51  ;;  %v1126_v24 = vld [vmem:[#allocation10 + $0x40] sm:$0xff]   ;;  %v1140_v51 = vld [vmem:[#allocation10 + $0x78] sm:$0xff]  }
  0x7f   :  { %409 = vmatprep.subr.bf16.mxu1 %v1057_v25  ;;  %v1127_v25 = vld [vmem:[#allocation10] sm:$0xff]  }
  0x81   :  { %653 = vmatpush1.bf16.msra.mxu0 %v1096_v52  ;;  %v1141_v52 = vld [vmem:[#allocation10 + $0x38] sm:$0xff]  }
  0x82   :  { %410 = vmatpush1.bf16.msra.mxu1 %v1059_v26  ;;  %654 = vmatprep.subr.bf16.mxu0 %v1101_v53  ;;  %v1128_v26 = vld [vmem:[#allocation10 + $0x48] sm:$0xff]   ;;  %v468_v53 = vld [vmem:[%s1461_s6] sm:$0x3] }
  0x83   :  { %411 = vmatprep.subr.bf16.mxu1 %v1060_v27  ;;  %v1129_v27 = vld [vmem:[#allocation10 + $0x8] sm:$0xff]  }
  0x85   :  { %655 = vmatpush1.bf16.msra.mxu0 %v1099_v54  ;;  %v473_v54 = vrot.slane %v468_v53, %v1420_v5 }
  0x86   :  { %412 = vmatpush1.bf16.msra.mxu1 %v1062_v28  ;;  %656 = vmatprep.subr.bf16.mxu0 %v1104_v55  ;;  %v1130_v28 = vld [vmem:[#allocation10 + $0x50] sm:$0xff]   ;;  %v477_v55 = vrot.slane %v468_v53, %v1425_v7 }
  0x87   :  { %413 = vmatprep.subr.bf16.mxu1 %v1063_v29  ;;  %v1131_v29 = vld [vmem:[#allocation10 + $0x10] sm:$0xff]  }
  0x89   :  { %657 = vmatpush1.bf16.msra.mxu0 %v1102_v56 }
  0x8a   :  { %414 = vmatpush1.bf16.msra.mxu1 %v1065_v30  ;;  %658 = vmatprep.subr.bf16.mxu0 %v1107_v57  ;;  %v1132_v30 = vld [vmem:[#allocation10 + $0x58] sm:$0xff]  }
  0x8b   :  { %415 = vmatprep.subr.bf16.mxu1 %v1066_v31  ;;  %v1133_v31 = vld [vmem:[#allocation10 + $0x18] sm:$0xff]  }
  0x8d   :  { %659 = vmatpush1.bf16.msra.mxu0 %v1105_v58 }
  0x8e   :  { %416 = vmatpush1.bf16.msra.mxu1 %v1068_v32  ;;  %660 = vmatprep.subr.bf16.mxu0 %v1110_v59  ;;  %v1134_v32 = vld [vmem:[#allocation10 + $0x60] sm:$0xff]  }
  0x8f   :  { %417 = vmatprep.subr.bf16.mxu1 %v1069_v33  ;;  %v1135_v33 = vld [vmem:[#allocation10 + $0x20] sm:$0xff]  }
  0x91   :  { %661 = vmatpush1.bf16.msra.mxu0 %v1108_v60 }
  0x92   :  { %418 = vmatpush1.bf16.msra.mxu1 %v1071_v34  ;;  %662 = vmatprep.subr.bf16.mxu0 %v1113_v61  ;;  %v1136_v34 = vld [vmem:[#allocation10 + $0x68] sm:$0xff]  }
  0x93   :  { %419 = vmatprep.subr.bf16.mxu1 %v1072_v35  ;;  %v1137_v35 = vld [vmem:[#allocation10 + $0x28] sm:$0xff]  }
  0x95   :  { %663 = vmatpush1.bf16.msra.mxu0 %v1111_v62 }
  0x96   :  { %420 = vmatpush1.bf16.msra.mxu1 %v1074_v36  ;;  %664 = vmatprep.subr.bf16.mxu0 %v1116_v63  ;;  %v219_v36 = vld [vmem:[%s1459_s4] sm:$0x3] }
  0x97   :  { %421 = vmatprep.subr.bf16.mxu1 %v1075_v37  ;;  %v224_v37 = vrot.slane %v219_v36, %v1420_v5  ;;  %v971_v5 = vld [vmem:[%s1463_s8] ss:$0 sm:$0xff]  ;;  %s1299_s8 = smov [#allocation11]  }
  0x98   :  { %s891_s12 = sshll.u32 %s1299_s8, 4  ;;  %s892_s12 = int_to_ptr.vmem [resolvable:$true] %s891_s12 }
  0x99   :  { %665 = vmatpush1.bf16.msra.mxu0 %v1114_v0  ;;  %s1258_s13 = scalar_lea.vmem %s892_s12, 64  ;;  %p1263_p13 = scmp.lt.s32.totalorder %s892_s12, %s892_s12 }
  0x9a   :  { %422 = vmatpush1.bf16.msra.mxu1 %v1077_v38  ;;  %666 = vmatprep.subr.bf16.mxu0 %v1119_v1  ;;  %v228_v38 = vrot.slane %v219_v36, %v1425_v7  ;;  %p1259_p12 = scmp.ne.s32.totalorder %s892_s12, %s1258_s13  ;;  %p1264_p0 = scmp.lt.s32.totalorder %s1258_s13, %s1258_s13 }
  0x9b   :  { %988 = vmatprep.subr.bf16.mxu1 %v1126_v24 }
  0x9c   :  { %p1265_p1 = por %p1264_p0, %p1263_p13 }
  0x9d   :  { %667 = vmatpush1.bf16.msra.mxu0 %v1117_v2  ;;  %v1298_v2 = vmov 16  }
  0x9e   :  { %668 = vmatprep.subr.bf16.mxu0 %v1122_v20  ;;  %1022 = vset.pattern.permute.xlu1 %v1298_v2  ;;  %p1266_p2 = pnand %p1265_p1, %p1259_p12 }
  0x9f   :  { %1023 = vset.pattern.permute.xlu0 %v1298_v2 }
  0xa1   :  { %669 = vmatpush1.bf16.msra.mxu0 %v1120_v21 }
  0xa2   :  { %670 = vmatprep.subr.bf16.mxu0 %v1125_v22 }
  0xa5   :  { %671 = vmatpush1.bf16.msra.mxu0 %v1123_v23 }
 0x136   :  { %v176_v10 = vpop.f32.mrb[0].mxu0 }
 0x137   :  { %v177_v11 = vadd.f32 %v176_v10, %v111_v8  ;;  %v178_v12 = vpop.f32.mrb[1].mxu0 }
 0x138   :  { %v179_v13 = vadd.f32 %v178_v12, %v115_v9  ;;  %v180_v14 = vpop.f32.mrb[2].mxu0 }
 0x139   :  { %v183_v15 = vmax.f32 %v177_v11, 0.0  ;;  %v181_v16 = vpop.f32.mrb[3].mxu0 }
 0x13a   :  { %v184_v17 = vmax.f32 %v179_v13, 0.0  ;;  %v861_v16 = vand.u32 127, %v108_v3 }
 0x13b   :  { %v185_v19 = vpack.c.bf16 %v183_v15, %v183_v15 }
 0x13c   :  { %v186_v18 = vpack.c.bf16 %v184_v17, %v184_v17  ;;  %vm862_vm2 = vcmp.lt.s32.totalorder %v861_v16, 16  ;;  %vm863_vm3 = vcmp.eq.s32.totalorder %v861_v16, 16 }
 0x13e   :  { %423 = vmatprep.mubr.bf16.mxu1 %v186_v18 }
 0x13f   :  { %424 = vmatmul.mubr.bf16.vlgmr.msra.gmra.mrb[0].mxu1 %v185_v19 }
 0x140   :  { %989 = vmatpush3.bf16.msra.mxu1 %v1127_v25 }
 0x141   :  { %990 = vmatprep.subr.bf16.mxu1 %v1128_v26 }
 0x144   :  { %991 = vmatpush3.bf16.msra.mxu1 %v1129_v27 }
 0x145   :  { %992 = vmatprep.subr.bf16.mxu1 %v1130_v28 }
 0x148   :  { %993 = vmatpush3.bf16.msra.mxu1 %v1131_v29 }
 0x149   :  { %994 = vmatprep.subr.bf16.mxu1 %v1132_v30 }
 0x14c   :  { %995 = vmatpush3.bf16.msra.mxu1 %v1133_v31 }
 0x14d   :  { %996 = vmatprep.subr.bf16.mxu1 %v1134_v32 }
 0x150   :  { %997 = vmatpush3.bf16.msra.mxu1 %v1135_v33 }
 0x151   :  { %998 = vmatprep.subr.bf16.mxu1 %v1136_v34 }
 0x154   :  { %999 = vmatpush3.bf16.msra.mxu1 %v1137_v35 }
 0x155   :  { %1000 = vmatprep.subr.bf16.mxu1 %v1138_v49 }
 0x158   :  { %1001 = vmatpush3.bf16.msra.mxu1 %v1139_v50 }
 0x159   :  { %1002 = vmatprep.subr.bf16.mxu1 %v1140_v51 }
 0x15c   :  { %1003 = vmatpush3.bf16.msra.mxu1 %v1141_v52 }
 0x212   :  { %v425_v39 = vpop.f32.mrb[0].mxu1 }
 0x213   :  { %v426_v40 = vadd.f32 %v425_v39, %v224_v37  ;;  %v427_v41 = vpop.f32.mrb[1].mxu1 }
 0x214   :  { %v428_v42 = vadd.f32 %v427_v41, %v228_v38  ;;  %v429_v43 = vpop.f32.mrb[2].mxu1 }
 0x215   :  { %v432_v44 = vmax.f32 %v426_v40, 0.0  ;;  %v430_v45 = vpop.f32.mrb[3].mxu1 }
 0x216   :  { %v433_v46 = vmax.f32 %v428_v42, 0.0 }
 0x217   :  { %v434_v48 = vpack.c.bf16 %v432_v44, %v432_v44 }
 0x218   :  { %v435_v47 = vpack.c.bf16 %v433_v46, %v433_v46 }
 0x21a   :  { %672 = vmatprep.mubr.bf16.mxu0 %v435_v47 }
 0x21b   :  { %673 = vmatmul.mubr.bf16.vlgmr.msra.gmra.mrb[4].mxu0 %v434_v48 }
 0x2ee   :  { %v674_v56 = vpop.f32.mrb[4].mxu0 }
 0x2ef   :  { %v675_v57 = vadd.f32 %v674_v56, %v473_v54  ;;  %v676_v58 = vpop.f32.mrb[5].mxu0 }
 0x2f0   :  { %v677_v59 = vadd.f32 %v676_v58, %v477_v55  ;;  %v678_v60 = vpop.f32.mrb[6].mxu0 }
 0x2f1   :  { %v681_v61 = vmax.f32 %v675_v57, 0.0  ;;  %v679_v62 = vpop.f32.mrb[7].mxu0 }
 0x2f2   :  { %v682_v63 = vmax.f32 %v677_v59, 0.0 }
 0x2f3   :  { %v683_v1 = vpack.c.bf16 %v681_v61, %v681_v61 }
 0x2f4   :  { %v684_v0 = vpack.c.bf16 %v682_v63, %v682_v63 }
 0x2f6   :  { %852 = vmatprep.mubr.bf16.mxu1 %v684_v0 }
 0x2f7   :  { %853 = vmatmul.mubr.bf16.vlgmr.msra.gmra.mrb[4].mxu1 %v683_v1 }
 0x3ca   :  { %v1004_v4 = vpop.f32.mrb[4].mxu1 }
 0x3cb   :  { %v1005_v6 = vpop.f32.mrb[5].mxu1 }
 0x3cc   :  { %v1006_v7 = vadd.f32 %v1005_v6, %v1004_v4  ;;  %v1007_v8 = vpop.f32.mrb[6].mxu1 }
 0x3cd   :  { %v1008_v9 = vpop.f32.mrb[7].mxu1 }
 0x3ce   :  { %v855_v10 = vadd.f32 %v1006_v7, %v971_v5 }
 0x3d0   :  { %1142 = vtanh.f32 %v855_v10  ;;  %v865_v11 = vsel %vm864_vm1, %v855_v10, -inf }
 0x3d1   :  { %866 = vmax.xlane.f32.xlu0 %v865_v11 }
 0x3da   :  { %v1143_v12 = vpop.eup %1142 }
 0x3db   :  { %879 = vperm.xlu1 %1022, %v1143_v12  }
 0x45a   :  { %v880_v22 = vpop.permute.xlu1 %879 }
 0x45e   :  { %v867_v13 = vpop.xlane.xlu0 %866 }
 0x45f   :  { %v868_v14 = vsub.f32 %v855_v10, %v867_v13 }
 0x461   :  { %v869_v15 = vmul.f32 1.442695, %v868_v14 }
 0x463   :  { %1144 = vpow2.f32 %v869_v15 }
 0x46d   :  { %v1145_v17 = vpop.eup %1144 }
 0x46e   :  { %v871_v18 = vsel %vm862_vm2, %v1145_v17, 0.0 }
 0x46f   :  { %872 = vadd.xlane.f32.xlu0 %v871_v18 }
 0x4fc   :  { %v873_v19 = vpop.xlane.xlu0 %872 }
 0x4fd   :  { %1146 = vrcp.f32 %v873_v19 }
 0x507   :  { %v1147_v20 = vpop.eup %1146 }
 0x508   :  { %v875_v21 = vmul.f32 %v1147_v20, %v871_v18 }
 0x50a   :  { %v882_v23 = vsel %vm863_vm3, %v880_v22, %v875_v21 }
 0x50b   :  { %v883_v24 = vpack.c.bf16 %v882_v23, %v882_v23 }
 0x50d   :  { %884 = vst [vmem:[#allocation11] sm:$0xf] %v883_v24 }
 0x50e   :  { %1269 = shalt.err (!%p1266_p2)
}
 0x50f   :  { %s1270_s14 = scalar_lea.hbm %s1464_s9, 64 }
 0x510   :  { %p1271_p3 = scmp.ne.s32.totalorder %s1464_s9, %s1270_s14  ;;  %p1274_p4 = scmp.lt.u32.totalorder %s1270_s14, %s1464_s9 }
 0x512   :  { %p1276_p5 = pnand %p1274_p4, %p1271_p3 }
 0x514   :  { %1279 = shalt.err (!%p1276_p5)
}
 0x515   :  { %894 = dma.vmem_to_hbm [thread:$0]  %s892_s12, 64, %s1464_s9, [#allocation4]  }
 0x516   :  { %1286 = dma.done.wait [#allocation4], 64  }
 0x517   :  { %1287 = vsyncadd [#allocation4], 4294967232 }
 0x518   :  { %898 = vsyncpa [#allocation3], 1 }
 0x519   :  { %899 = vsyncpa [#allocation6], 1 }
 0x51a   :  { %900 = vsyncpa [#allocation9], 1 }
 0x51b   :  { %901 = vsyncpa [#allocation4], 1 }

</bundles_post_ra>
